<compile_context>
chip_gen: v7x
topology: tpu7x:2x2x1
jax: 0.10.0
libtpu: 0.0.40
codegen_flags: <defaults>
</compile_context>

<pallas_src>
import functools

import jax
import jax.numpy as jnp
from jax import lax
from jax.experimental import pallas as pl
from jax.experimental.pallas import tpu as pltpu


def _lane_shift_left(v, d):
    """result[:, p] = v[:, p + d] for p < L - d (last d lanes wrap; they are don't-care:
    they correspond exactly to output positions a VALID 3x3 conv discards and are cropped
    by the wrapper).  Static d -> two static lane slices + a concatenate."""
    if d == 0:
        return v
    return jnp.concatenate([v[:, d:], v[:, :d]], axis=-1)


def _conv3x3_bn_kernel(x_ref, w_ref, shift_ref, o_ref, *, img_w, compute_dtype):
    # x_ref:     (Cin, L)       one image, spatial flattened to lanes (L = H*W), bf16
    # w_ref:     (Cout, 9*Cin)  conv weight with BN scale folded in; columns tap-major
    # shift_ref: (Cout, 1)      folded BN shift, f32
    # o_ref:     (Cout, L)      output on the full H*W grid (wrapper crops to (H-2, W-2))
    #
    # Build the implicit im2col in f32 (sublane-tile-aligned concat), cast once to the
    # MXU compute dtype, then a single matmul covers all 9 taps.
    x = x_ref[...].astype(jnp.float32)                              # (Cin, L)
    cols = []
    for ky in range(3):
        for kx in range(3):
            cols.append(_lane_shift_left(x, ky * img_w + kx))
    xcol = jnp.concatenate(cols, axis=0).astype(compute_dtype)      # (9*Cin, L)

    y = jnp.dot(w_ref[...], xcol,
                preferred_element_type=jnp.float32)                 # (Cout, L) f32

    o_ref[...] = (y + shift_ref[...]).astype(o_ref.dtype)


@functools.partial(jax.jit, static_argnames=("eps", "compute_dtype", "out_dtype"))
def adjust_layer_resnet(x, conv_w, gamma, beta, running_mean, running_var, *,
                        eps=1e-5, compute_dtype=jnp.bfloat16, out_dtype=None):
    """3x3 VALID Conv2d (bias=False) + eval-mode BatchNorm2d.  NCHW in / NCHW out.

    x:      (N, Cin, H, W)
    conv_w: (Cout, Cin, 3, 3)   (PyTorch OIHW layout)
    gamma / beta / running_mean / running_var: (Cout,)
    (The module as written -- BatchNorm2d(inchannels) after Conv2d(..., out_channels) --
    is only runnable when out_channels == inchannels, so BN params are sized Cout here.)
    """
    n, cin, h, w = x.shape
    cout = conv_w.shape[0]
    ho, wo = h - 2, w - 2
    spatial = h * w
    out_dtype = x.dtype if out_dtype is None else out_dtype

    # ---- fold BatchNorm (eval: running stats) --------------------------------------
    scale = (gamma.astype(jnp.float32)
             / jnp.sqrt(running_var.astype(jnp.float32) + eps))          # (Cout,)
    shift = beta.astype(jnp.float32) - running_mean.astype(jnp.float32) * scale
    shift2 = shift.reshape(cout, 1)                                      # (Cout, 1) f32

    # Fold the BN scale into the (tiny) conv weight; lay the 9 taps out tap-major on the
    # column axis so the whole conv is a single (Cout, 9*Cin) x (9*Cin, H*W) matmul.
    w_folded = conv_w.astype(jnp.float32) * scale[:, None, None, None]   # (Cout,Cin,3,3)
    w2 = (jnp.transpose(w_folded, (0, 2, 3, 1))                          # (Cout,3,3,Cin)
          .reshape(cout, 9 * cin).astype(compute_dtype))                 # (Cout, 9*Cin)

    # Activations: keep NCHW; only a free reshape + cast to the MXU compute dtype.
    xf = x.reshape(n, cin, spatial).astype(compute_dtype)                # (N, Cin, H*W)

    cost = pl.CostEstimate(
        flops=2 * n * cout * (9 * cin) * spatial,
        transcendentals=0,
        bytes_accessed=(xf.size * xf.dtype.itemsize
                        + w2.size * w2.dtype.itemsize
                        + shift2.size * 4
                        + n * cout * spatial * jnp.dtype(out_dtype).itemsize),
    )

    out_flat = pl.pallas_call(
        functools.partial(_conv3x3_bn_kernel, img_w=w, compute_dtype=compute_dtype),
        out_shape=jax.ShapeDtypeStruct((n, cout, spatial), out_dtype),
        grid=(n,),
        in_specs=[
            # One full image per grid step (large tile; lane dim = H*W).
            pl.BlockSpec((None, cin, spatial), lambda i: (i, 0, 0)),
            # Invariant operands: constant index maps (fetched once, stay resident).
            pl.BlockSpec((cout, 9 * cin), lambda i: (0, 0)),
            pl.BlockSpec((cout, 1), lambda i: (0, 0)),
        ],
        out_specs=pl.BlockSpec((None, cout, spatial), lambda i: (i, 0, 0)),
        compiler_params=pltpu.CompilerParams(
            dimension_semantics=("parallel",),       # batch axis shards across TCs
        ),
        cost_estimate=cost,
    )(xf, w2, shift2)

    # (N, Cout, H*W) -> (N, Cout, H, W) is free; crop to the VALID-conv output window.
    return out_flat.reshape(n, cout, h, w)[:, :, :ho, :wo]


if __name__ == "__main__":
    key = jax.random.PRNGKey(0)
    k_x, k_w, k_g, k_b, k_m, k_v = jax.random.split(key, 6)

    # The module (Conv2d(cin, cout, 3) -> BatchNorm2d(cin)) only runs when cin == cout.
    N, CIN, COUT, H, W = 2, 8, 8, 16, 16
    EPS = 1e-5

    x = jax.random.normal(k_x, (N, CIN, H, W), dtype=jnp.float32)
    conv_w = jax.random.normal(k_w, (COUT, CIN, 3, 3), dtype=jnp.float32) * 0.1
    gamma = 1.0 + 0.1 * jax.random.normal(k_g, (COUT,), dtype=jnp.float32)
    beta = 0.1 * jax.random.normal(k_b, (COUT,), dtype=jnp.float32)
    running_mean = 0.1 * jax.random.normal(k_m, (COUT,), dtype=jnp.float32)
    running_var = 1.0 + 0.1 * jax.random.uniform(k_v, (COUT,), dtype=jnp.float32)

    out = adjust_layer_resnet(x, conv_w, gamma, beta, running_mean, running_var, eps=EPS)
    out = jax.block_until_ready(out)
    assert out.shape == (N, COUT, H - 2, W - 2)

    # ---- references ------------------------------------------------------------------
    scale = gamma / jnp.sqrt(running_var + EPS)
    shift = beta - running_mean * scale

    # (a) exact f32 semantics of the PyTorch module (3x3 VALID conv + eval BatchNorm).
    y_conv = lax.conv_general_dilated(
        x, conv_w, window_strides=(1, 1), padding="VALID",
        dimension_numbers=("NCHW", "OIHW", "NCHW"),
        precision=lax.Precision.HIGHEST)
    y_ref = y_conv * scale[None, :, None, None] + shift[None, :, None, None]

    # (b) same math with the kernel's bf16-rounded inputs -> tight check of the kernel.
    x_bf = x.astype(jnp.bfloat16).astype(jnp.float32)
    w_folded_bf = (conv_w * scale[:, None, None, None]).astype(
        jnp.bfloat16).astype(jnp.float32)
    y_bf = lax.conv_general_dilated(
        x_bf, w_folded_bf, window_strides=(1, 1), padding="VALID",
        dimension_numbers=("NCHW", "OIHW", "NCHW"),
        precision=lax.Precision.HIGHEST) + shift[None, :, None, None]

    assert jnp.allclose(out, y_bf, atol=2e-3, rtol=2e-3), "mismatch vs bf16-exact reference"
    assert jnp.allclose(out, y_ref, atol=5e-2, rtol=5e-2), "mismatch vs f32 module reference"

    print("KERNEL_OK")
</pallas_src>

<mosaic_0001>
module attributes {stable_mosaic.version = 11 : i64} {
  func.func @_conv3x3_bn_kernel(%arg0: i32, %arg1: memref<1x8x256xbf16, #tpu.memory_space<vmem>>, %arg2: memref<8x72xbf16, #tpu.memory_space<vmem>>, %arg3: memref<8x1xf32, #tpu.memory_space<vmem>>, %arg4: memref<1x8x256xf32, #tpu.memory_space<vmem>>) attributes {dimension_semantics = [#tpu.dimension_semantics<parallel>], iteration_bounds = array<i64: 2>, scalar_prefetch = 0 : i64, scratch_operands = 0 : i64, tpu.core_type = #tpu.core_type<tc>, window_params = [{transform_indices = @transform_0, window_bounds = array<i64: 1, 8, 256>}, {pipeline_mode = #tpu.pipeline_mode<synchronous>, transform_indices = @transform_1, window_bounds = array<i64: 8, 72>}, {pipeline_mode = #tpu.pipeline_mode<synchronous>, transform_indices = @transform_2, window_bounds = array<i64: 8, 1>}, {transform_indices = @transform_3, window_bounds = array<i64: 1, 8, 256>}]} {
    %c0 = arith.constant 0 : index
    %c0_0 = arith.constant 0 : index
    %c0_1 = arith.constant 0 : index
    %0 = vector.load %arg1[%c0, %c0_0, %c0_1] : memref<1x8x256xbf16, #tpu.memory_space<vmem>>, vector<1x8x256xbf16>
    %1 = vector.shape_cast %0 : vector<1x8x256xbf16> to vector<8x256xbf16>
    %2 = arith.extf %1 : vector<8x256xbf16> to vector<8x256xf32>
    %3 = vector.extract_strided_slice %2 {offsets = [0, 1], sizes = [8, 255], strides = [1, 1]} : vector<8x256xf32> to vector<8x255xf32>
    %4 = vector.extract_strided_slice %2 {offsets = [0, 0], sizes = [8, 1], strides = [1, 1]} : vector<8x256xf32> to vector<8x1xf32>
    %5 = tpu.concatenate %3, %4 in 1 : vector<8x255xf32>, vector<8x1xf32> -> vector<8x256xf32>
    %6 = vector.extract_strided_slice %2 {offsets = [0, 2], sizes = [8, 254], strides = [1, 1]} : vector<8x256xf32> to vector<8x254xf32>
    %7 = vector.extract_strided_slice %2 {offsets = [0, 0], sizes = [8, 2], strides = [1, 1]} : vector<8x256xf32> to vector<8x2xf32>
    %8 = tpu.concatenate %6, %7 in 1 : vector<8x254xf32>, vector<8x2xf32> -> vector<8x256xf32>
    %9 = vector.extract_strided_slice %2 {offsets = [0, 16], sizes = [8, 240], strides = [1, 1]} : vector<8x256xf32> to vector<8x240xf32>
    %10 = vector.extract_strided_slice %2 {offsets = [0, 0], sizes = [8, 16], strides = [1, 1]} : vector<8x256xf32> to vector<8x16xf32>
    %11 = tpu.concatenate %9, %10 in 1 : vector<8x240xf32>, vector<8x16xf32> -> vector<8x256xf32>
    %12 = vector.extract_strided_slice %2 {offsets = [0, 17], sizes = [8, 239], strides = [1, 1]} : vector<8x256xf32> to vector<8x239xf32>
    %13 = vector.extract_strided_slice %2 {offsets = [0, 0], sizes = [8, 17], strides = [1, 1]} : vector<8x256xf32> to vector<8x17xf32>
    %14 = tpu.concatenate %12, %13 in 1 : vector<8x239xf32>, vector<8x17xf32> -> vector<8x256xf32>
    %15 = vector.extract_strided_slice %2 {offsets = [0, 18], sizes = [8, 238], strides = [1, 1]} : vector<8x256xf32> to vector<8x238xf32>
    %16 = vector.extract_strided_slice %2 {offsets = [0, 0], sizes = [8, 18], strides = [1, 1]} : vector<8x256xf32> to vector<8x18xf32>
    %17 = tpu.concatenate %15, %16 in 1 : vector<8x238xf32>, vector<8x18xf32> -> vector<8x256xf32>
    %18 = vector.extract_strided_slice %2 {offsets = [0, 32], sizes = [8, 224], strides = [1, 1]} : vector<8x256xf32> to vector<8x224xf32>
    %19 = vector.extract_strided_slice %2 {offsets = [0, 0], sizes = [8, 32], strides = [1, 1]} : vector<8x256xf32> to vector<8x32xf32>
    %20 = tpu.concatenate %18, %19 in 1 : vector<8x224xf32>, vector<8x32xf32> -> vector<8x256xf32>
    %21 = vector.extract_strided_slice %2 {offsets = [0, 33], sizes = [8, 223], strides = [1, 1]} : vector<8x256xf32> to vector<8x223xf32>
    %22 = vector.extract_strided_slice %2 {offsets = [0, 0], sizes = [8, 33], strides = [1, 1]} : vector<8x256xf32> to vector<8x33xf32>
    %23 = tpu.concatenate %21, %22 in 1 : vector<8x223xf32>, vector<8x33xf32> -> vector<8x256xf32>
    %24 = vector.extract_strided_slice %2 {offsets = [0, 34], sizes = [8, 222], strides = [1, 1]} : vector<8x256xf32> to vector<8x222xf32>
    %25 = vector.extract_strided_slice %2 {offsets = [0, 0], sizes = [8, 34], strides = [1, 1]} : vector<8x256xf32> to vector<8x34xf32>
    %26 = tpu.concatenate %24, %25 in 1 : vector<8x222xf32>, vector<8x34xf32> -> vector<8x256xf32>
    %27 = tpu.concatenate %2, %5, %8, %11, %14, %17, %20, %23, %26 in 0 : vector<8x256xf32>, vector<8x256xf32>, vector<8x256xf32>, vector<8x256xf32>, vector<8x256xf32>, vector<8x256xf32>, vector<8x256xf32>, vector<8x256xf32>, vector<8x256xf32> -> vector<72x256xf32>
    %28 = arith.truncf %27 : vector<72x256xf32> to vector<72x256xbf16>
    %c0_2 = arith.constant 0 : index
    %c0_3 = arith.constant 0 : index
    %29 = vector.load %arg2[%c0_2, %c0_3] : memref<8x72xbf16, #tpu.memory_space<vmem>>, vector<8x72xbf16>
    %cst = arith.constant dense<0.000000e+00> : vector<8x256xf32>
    %30 = tpu.matmul %29, %28, %cst {dimension_numbers = #tpu.dot_dimension_numbers<[1], [0], [0], [1], [0, 0, 1, 1], [], []>} : vector<8x72xbf16>, vector<72x256xbf16>, vector<8x256xf32> -> vector<8x256xf32>
    %c0_4 = arith.constant 0 : index
    %c0_5 = arith.constant 0 : index
    %31 = vector.load %arg3[%c0_4, %c0_5] : memref<8x1xf32, #tpu.memory_space<vmem>>, vector<8x1xf32>
    %32 = vector.broadcast %31 : vector<8x1xf32> to vector<8x256xf32>
    %33 = arith.addf %30, %32 : vector<8x256xf32>
    %c0_6 = arith.constant 0 : index
    %c0_7 = arith.constant 0 : index
    %c0_8 = arith.constant 0 : index
    %34 = vector.load %arg4[%c0_6, %c0_7, %c0_8] : memref<1x8x256xf32, #tpu.memory_space<vmem>>, vector<1x8x256xf32>
    %35 = vector.shape_cast %34 : vector<1x8x256xf32> to vector<8x256xf32>
    %36 = vector.shape_cast %33 : vector<8x256xf32> to vector<1x8x256xf32>
    tpu.vector_store %arg4[%c0_6, %c0_7, %c0_8], %36 {strides = array<i32>} : memref<1x8x256xf32, #tpu.memory_space<vmem>>, vector<1x8x256xf32>,
    return
  }
  func.func @transform_0(%arg0: i32) -> (i32, i32, i32) {
    %c0_i32 = arith.constant 0 : i32
    %c0_i32_0 = arith.constant 0 : i32
    %c0_i32_1 = arith.constant 0 : i32
    return %arg0, %c0_i32, %c0_i32_0 : i32, i32, i32
  }
  func.func @transform_1(%arg0: i32) -> (i32, i32) {
    %c0_i32 = arith.constant 0 : i32
    %c0_i32_0 = arith.constant 0 : i32
    %c0_i32_1 = arith.constant 0 : i32
    return %c0_i32, %c0_i32_0 : i32, i32
  }
  func.func @transform_2(%arg0: i32) -> (i32, i32) {
    %c0_i32 = arith.constant 0 : i32
    %c0_i32_0 = arith.constant 0 : i32
    %c0_i32_1 = arith.constant 0 : i32
    return %c0_i32, %c0_i32_0 : i32, i32
  }
  func.func @transform_3(%arg0: i32) -> (i32, i32, i32) {
    %c0_i32 = arith.constant 0 : i32
    %c0_i32_0 = arith.constant 0 : i32
    %c0_i32_1 = arith.constant 0 : i32
    return %arg0, %c0_i32, %c0_i32_0 : i32, i32, i32
  }
}

</mosaic_0001>

<bundles_post_ra>
// kernel: adjust_layer_resnet.1
= control target key start
LH: loop header
LB: loop body
LE: loop exit
PB: predicated region body
PF: predicated region fallthrough
CT: control target
= control target key end

     0   :  { %s493_s12 = smov 0   ;;  %s526_s0 = inlined_call_operand.vmem [shape: bf16[2,8,256], index: 0, kind: input, shape index: {}]   ;;  %s527_s1 = inlined_call_operand.vmem [shape: bf16[8,72], index: 1, kind: input, shape index: {}]   ;;  %s528_s2 = inlined_call_operand.vmem [shape: f32[8,1], index: 2, kind: input, shape index: {}]   ;;  %s529_s3 = inlined_call_operand.vmem [shape: f32[2,8,256], index: 3, kind: output, shape index: {}]  }
   0x1 LB: > { %s383_s13 = sadd.s32 4294967295, %s462_s12   ;;  %p387_p0 = scmp.ge.s32.totalorder %s462_s12, 1  ;;  %s462_s12 = sphi %s493_s12, %s13_s12  }
   0x2   : > { %p137_p1 = scmp.lt.s32.totalorder %s462_s12, 3 }
   0x4   : > { %p138_p2 = pnand %p387_p0, %p137_p1 }
   0x5   : > { %p161_p3 = scmp.lt.s32.totalorder (!%p138_p2), %s383_s13, 1  ;;  %s464_s18 = smov (!%p138_p2), 127   ;;  %v470_v4 = vmov (!%p138_p2), 0   ;;  %v268_v5 = vld [vmem:[%s528_s2] sm:$0xff] (!%p138_p2)  ;;  %vm181_vm0 = vcmask (!%p138_p2), 1039360   ;;  %vm201_vm1 = vcmask (!%p138_p2), 916480  }
   0x6   : > { %141 = sbr.rel (%p138_p2) target bundleno = 377 (0x179), region = 32  ;;  %s465_s19 = smov (!%p138_p2), 112   ;;  %317 = vmatprep.mubr.bf16.mxu0 (!%p138_p2), %v470_v4  ;;  %455 = vset.pattern.permute.xlu0 (!%p138_p2), %v470_v4  ;;  %vm191_vm2 = vcmask (!%p138_p2), 1031168   ;;  %vm211_vm3 = vcmask (!%p138_p2), 908288   ;;  %vm221_vm4 = vcmask (!%p138_p2), 900096   ;;  %vm231_vm5 = vcmask (!%p138_p2), 785408  }
   0x7   : > { %s466_s20 = smov (!%p138_p2), 126   ;;  %s467_s21 = smov (!%p138_p2), 111   ;;  %vm251_vm6 = vcmask (!%p138_p2), 769024   ;;  %vm241_vm7 = vcmask (!%p138_p2), 777216   ;;  %vm278_vm8 = vcmask (!%p138_p2), 1043456   ;;  %vm274_vm9 = vcmask (!%p138_p2), 588800  }
   0x8   : > { %s468_s22 = smov (!%p138_p2), 110   ;;  %s469_s23 = smov (!%p138_p2), 96   ;;  %v267_v57 = vld [vmem:[%s527_s1] sm:$0xf] (!%p138_p2) }
   0x9   : > { %s471_s24 = smov (!%p138_p2), 95   ;;  %s472_s25 = smov (!%p138_p2), 94  }
   0xd   : > { %s531_s13 = smov (!%p161_p3, %s383_s13), 1 }
   0xe   : > { %s396_s14 = sshll.u32 %s531_s13, 3  ;;  %s397_s30 = sshll.u32 %s531_s13, 4 }
   0xf   : > { %s165_s17 = scalar_lea.vmem %s526_s0, %s396_s14  ;;  %s170_s6 = scalar_lea.vmem %s529_s3, %s397_s30 }
  0x10   : > { %v172_v0 = vld [vmem:[%s165_s17] sm:$0xff] }
  0x11   : > { %v173_v1 = vunpack.c.l.bf16 %v172_v0  ;;  %v174_v2 = vunpack.c.h.bf16 %v172_v0 }
  0x13   : > { %v415_v3 = vpack.i.bf16 %v174_v2, %v173_v1 }
  0x15   : > { %416 = vrot.lane.b32.xlu0 %v415_v3, %s464_s18  ;;  %426 = vrot.lane.b32.xlu1 %v415_v3, %s465_s19 }
  0x19   : > { %421 = vrot.lane.b32.xlu0 %v415_v3, %s466_s20  ;;  %431 = vrot.lane.b32.xlu1 %v415_v3, %s467_s21 }
  0x1d   : > { %436 = vrot.lane.b32.xlu0 %v415_v3, %s468_s22  ;;  %441 = vrot.lane.b32.xlu1 %v415_v3, %s469_s23 }
  0x21   : > { %446 = vrot.lane.b32.xlu0 %v415_v3, %s471_s24  ;;  %451 = vrot.lane.b32.xlu1 %v415_v3, %s472_s25 }
  0x25   : > { %271 = vperm.xlu0 %455, %v268_v5  }
  0x87   : > { %v417_v6 = vpop.permute.xlu0 %416  ;;  %v427_v7 = vpop.permute.xlu1 %426 }
  0x88   : > { %v419_v8 = vunpack.i.h.bf16 %v417_v6  ;;  %v418_v9 = vunpack.i.l.bf16 %v417_v6  ;;  %v429_v10 = vunpack.i.h.bf16 %v427_v7  ;;  %v428_v11 = vunpack.i.l.bf16 %v427_v7 }
  0x8a   : > { %v186_v12 = vsel %vm181_vm0, %v419_v8, %v418_v9  ;;  %v182_v13 = vsel %vm181_vm0, %v418_v9, %v419_v8  ;;  %v206_v18 = vsel %vm201_vm1, %v429_v10, %v428_v11  ;;  %v202_v19 = vsel %vm201_vm1, %v428_v11, %v429_v10 }
  0x8b   : > { %v422_v14 = vpop.permute.xlu0 %421  ;;  %v258_v15 = vpack.c.bf16 %v186_v12, %v174_v2  ;;  %v257_v16 = vpack.c.bf16 %v182_v13, %v173_v1  ;;  %v432_v17 = vpop.permute.xlu1 %431 }
  0x8c   : > { %v424_v20 = vunpack.i.h.bf16 %v422_v14  ;;  %v423_v21 = vunpack.i.l.bf16 %v422_v14  ;;  %v434_v22 = vunpack.i.h.bf16 %v432_v17  ;;  %v433_v23 = vunpack.i.l.bf16 %v432_v17 }
  0x8d   : > { %285 = vmatprep.subr.bf16.mxu0 %v258_v15 }
  0x8e   : > { %286 = vmatpush1.bf16.msra.mxu0 %v257_v16  ;;  %v196_v24 = vsel %vm191_vm2, %v424_v20, %v423_v21  ;;  %v192_v25 = vsel %vm191_vm2, %v423_v21, %v424_v20  ;;  %v216_v30 = vsel %vm211_vm3, %v434_v22, %v433_v23  ;;  %v212_v31 = vsel %vm211_vm3, %v433_v23, %v434_v22 }
  0x8f   : > { %v437_v26 = vpop.permute.xlu0 %436  ;;  %v260_v27 = vpack.c.bf16 %v206_v18, %v196_v24  ;;  %v259_v28 = vpack.c.bf16 %v202_v19, %v192_v25  ;;  %v442_v29 = vpop.permute.xlu1 %441 }
  0x90   : > { %v439_v32 = vunpack.i.h.bf16 %v437_v26  ;;  %v438_v33 = vunpack.i.l.bf16 %v437_v26  ;;  %v444_v34 = vunpack.i.h.bf16 %v442_v29  ;;  %v443_v35 = vunpack.i.l.bf16 %v442_v29 }
  0x91   : > { %287 = vmatprep.subr.bf16.mxu0 %v260_v27 }
  0x92   : > { %288 = vmatpush1.bf16.msra.mxu0 %v259_v28  ;;  %v226_v36 = vsel %vm221_vm4, %v439_v32, %v438_v33  ;;  %v222_v37 = vsel %vm221_vm4, %v438_v33, %v439_v32  ;;  %v236_v42 = vsel %vm231_vm5, %v444_v34, %v443_v35  ;;  %v232_v43 = vsel %vm231_vm5, %v443_v35, %v444_v34 }
  0x93   : > { %v447_v38 = vpop.permute.xlu0 %446  ;;  %v262_v39 = vpack.c.bf16 %v226_v36, %v216_v30  ;;  %v261_v40 = vpack.c.bf16 %v222_v37, %v212_v31  ;;  %v452_v41 = vpop.permute.xlu1 %451 }
  0x94   : > { %v449_v44 = vunpack.i.h.bf16 %v447_v38  ;;  %v448_v45 = vunpack.i.l.bf16 %v447_v38  ;;  %v454_v46 = vunpack.i.h.bf16 %v452_v41  ;;  %v453_v47 = vunpack.i.l.bf16 %v452_v41 }
  0x95   : > { %289 = vmatprep.subr.bf16.mxu0 %v262_v39 }
  0x96   : > { %290 = vmatpush1.bf16.msra.mxu0 %v261_v40  ;;  %v256_v48 = vsel %vm251_vm6, %v454_v46, %v453_v47  ;;  %v246_v49 = vsel %vm241_vm7, %v449_v44, %v448_v45  ;;  %v242_v50 = vsel %vm241_vm7, %v448_v45, %v449_v44  ;;  %v252_v51 = vsel %vm251_vm6, %v453_v47, %v454_v46 }
  0x97   : > { %v266_v52 = vpack.c.bf16 %v256_v48, %v256_v48  ;;  %v264_v53 = vpack.c.bf16 %v246_v49, %v236_v42  ;;  %v263_v54 = vpack.c.bf16 %v242_v50, %v232_v43  ;;  %v265_v55 = vpack.c.bf16 %v252_v51, %v252_v51 }
  0x99   : > { %291 = vmatprep.subr.bf16.mxu0 %v264_v53  ;;  %v280_v56 = vsel %vm278_vm8, %v265_v55, 0 }
  0x9a   : > { %292 = vmatpush1.bf16.msra.mxu0 %v263_v54 }
  0x9b   : > { %392 = vmatprep.subr.msk.bf16.mxu0 %vm278_vm8, %v266_v52 }
  0x9e   : > { %294 = vmatpush1.bf16.msra.mxu0 %v280_v56 }
  0xa1   : > { %393 = vmatmul.mubr.msk.bf16.vlgmr.msra.gmra.mrb[0].mxu0 %vm274_vm9, %v267_v57 }
  0xa4   : > { %v272_v58 = vpop.permute.xlu0 %271 }
 0x174   : > { %v319_v59 = vpop.f32.mrb[0].mxu0 }
 0x175   : > { %v320_v60 = vadd.f32 %v319_v59, %v272_v58  ;;  %v321_v61 = vpop.f32.mrb[1].mxu0 }
 0x176   : > { %v322_v62 = vadd.f32 %v321_v61, %v272_v58  ;;  %v323_v63 = vpop.f32.mrb[2].mxu0 }
 0x177   : > { %326 = vst [vmem:[%s170_s6] sm:$0xff] %v320_v60  ;;  %v324_v0 = vpop.f32.mrb[3].mxu0 }
 0x178   : > { %327 = vst [vmem:[%s170_s6 + $0x8] sm:$0xff] %v322_v62 }
 0x179 PF: > { %s13_s12 = sadd.s32 1, %s462_s12  }
 0x17a   : > { %p10_p4 = scmp.ge.s32.totalorder %s13_s12, 4  }
 0x17c   :  { %12 = sbr.rel (!%p10_p4) target bundleno = 1 (0x1), region = 62 }

</bundles_post_ra>
